<compile_context>
chip_gen: v7x
topology: tpu7x:2x2x1
jax: 0.10.0
libtpu: 0.0.40
codegen_flags: <defaults>
</compile_context>

<pallas_src>
import jax
import jax.numpy as jnp
from jax.experimental import pallas as pl
from jax.experimental.pallas import tpu as pltpu

UNITS = 128
IN_FEATURES = 600 * 4  # 2400
BN_EPS = 1e-5


def eyebase_kernel(x_ref, w1_ref, w2_ref, w3_ref, c_ref, o_ref):
    """Fused D1+BN1+ReLU -> D2+BN2+ReLU -> D3+ReLU on one (TB, ...) batch tile."""
    x = x_ref[...].astype(jnp.bfloat16)              # f32 stream, cast in-kernel
    c1 = c_ref[0:1, :]                               # (1, 128) f32, BN-folded biases
    c2 = c_ref[1:2, :]
    c3 = c_ref[2:3, :]

    h = jnp.dot(x, w1_ref[...], preferred_element_type=jnp.float32) + c1
    h = jnp.maximum(h, 0.0)

    h = jnp.dot(h.astype(jnp.bfloat16), w2_ref[...],
                preferred_element_type=jnp.float32) + c2
    h = jnp.maximum(h, 0.0)

    h = jnp.dot(h.astype(jnp.bfloat16), w3_ref[...],
                preferred_element_type=jnp.float32) + c3
    o_ref[...] = jnp.maximum(h, 0.0)


def _round_up(x, m):
    return (x + m - 1) // m * m


def eyebase_forward(x_ncw, fused, *, batch_tile=1024):
    """x_ncw: (B, 4, 600) float. Returns (B, 128) float32 (eval-mode BatchNorm)."""
    B = x_ncw.shape[0]
    x_flat = x_ncw.reshape(B, -1)                     # nn.Flatten over (C, W)
    if x_flat.dtype != jnp.float32:
        x_flat = x_flat.astype(jnp.float32)           # kernel casts to bf16 internally

    w1, w2, w3, cpack = fused["w1"], fused["w2"], fused["w3"], fused["cpack"]

    # Batch tile: multiple of 8 sublanes; keep >= ~4 grid steps so the batch
    # axis can shard across both v7x TensorCores; cap by batch_tile.
    tb = max(8, min(batch_tile, _round_up(pl.cdiv(B, 4), 8)))

    b_rows = B
    if B < tb:  # tiny batch: pad up to exactly one tile (cheap, few rows)
        x_flat = jnp.pad(x_flat, ((0, tb - B), (0, 0)))
        b_rows = tb
    grid = (pl.cdiv(b_rows, tb),)                     # partial last block allowed

    # VMEM budget: double-buffered x / out tiles + (double-buffered) weights.
    w_bytes = w1.size * 2 + w2.size * 2 + w3.size * 2 + cpack.size * 4
    vmem_need = 2 * (tb * IN_FEATURES * 4 + tb * UNITS * 4 + w_bytes)
    vmem_limit = vmem_need + (8 << 20)                # headroom for temporaries

    flops = 2 * b_rows * (IN_FEATURES * UNITS + 2 * UNITS * UNITS)
    bytes_accessed = (x_flat.size * 4                 # f32 x stream
                      + w_bytes
                      + b_rows * UNITS * 4)           # f32 output

    out = pl.pallas_call(
        eyebase_kernel,
        out_shape=jax.ShapeDtypeStruct((b_rows, UNITS), jnp.float32),
        grid=grid,
        in_specs=[
            pl.BlockSpec((tb, IN_FEATURES), lambda i: (i, 0)),      # x: streamed
            pl.BlockSpec((IN_FEATURES, UNITS), lambda i: (0, 0)),   # weights: resident
            pl.BlockSpec((UNITS, UNITS), lambda i: (0, 0)),
            pl.BlockSpec((UNITS, UNITS), lambda i: (0, 0)),
            pl.BlockSpec((8, UNITS), lambda i: (0, 0)),             # packed biases
        ],
        out_specs=pl.BlockSpec((tb, UNITS), lambda i: (i, 0)),
        compiler_params=pltpu.CompilerParams(
            dimension_semantics=("parallel",),
            vmem_limit_bytes=vmem_limit),
        cost_estimate=pl.CostEstimate(
            flops=flops, transcendentals=0, bytes_accessed=bytes_accessed),
    )(x_flat, w1, w2, w3, cpack)
    return out[:B]


def init_params(key):
    """Deterministic PyTorch-default-style init + non-trivial eval-mode BN stats."""
    ks = jax.random.split(key, 14)

    def linear(kw, kb, fan_in, fan_out):
        bound = 1.0 / jnp.sqrt(fan_in)
        # stored as (in, out) so the kernel computes x @ W  (== x @ W_torch.T)
        w = jax.random.uniform(kw, (fan_in, fan_out), jnp.float32, -bound, bound)
        b = jax.random.uniform(kb, (1, fan_out), jnp.float32, -bound, bound)
        return w, b

    w1, b1 = linear(ks[0], ks[1], IN_FEATURES, UNITS)
    w2, b2 = linear(ks[2], ks[3], UNITS, UNITS)
    w3, b3 = linear(ks[4], ks[5], UNITS, UNITS)

    def bn(kg, kb, km, kv):
        gamma = 1.0 + 0.1 * jax.random.normal(kg, (1, UNITS), jnp.float32)
        beta = 0.1 * jax.random.normal(kb, (1, UNITS), jnp.float32)
        mean = 0.05 * jax.random.normal(km, (1, UNITS), jnp.float32)
        var = 1.0 + 0.1 * jnp.abs(jax.random.normal(kv, (1, UNITS), jnp.float32))
        return gamma, beta, mean, var

    g1, be1, m1, v1 = bn(ks[6], ks[7], ks[8], ks[9])
    g2, be2, m2, v2 = bn(ks[10], ks[11], ks[12], ks[13])

    return dict(w1=w1, b1=b1, w2=w2, b2=b2, w3=w3, b3=b3,
                bn1_gamma=g1, bn1_beta=be1, bn1_mean=m1, bn1_var=v1,
                bn2_gamma=g2, bn2_beta=be2, bn2_mean=m2, bn2_var=v2)


def fuse_params(p):
    """Fold eval-mode BN into the weights/biases and pack biases into one (8,128) block."""
    s1 = p["bn1_gamma"] * jax.lax.rsqrt(p["bn1_var"] + BN_EPS)
    t1 = p["bn1_beta"] - p["bn1_mean"] * s1
    s2 = p["bn2_gamma"] * jax.lax.rsqrt(p["bn2_var"] + BN_EPS)
    t2 = p["bn2_beta"] - p["bn2_mean"] * s2

    w1 = (p["w1"] * s1).astype(jnp.bfloat16)   # column scale folds BN1 into D1
    w2 = (p["w2"] * s2).astype(jnp.bfloat16)
    w3 = p["w3"].astype(jnp.bfloat16)
    c1 = p["b1"] * s1 + t1
    c2 = p["b2"] * s2 + t2
    c3 = p["b3"]
    cpack = jnp.concatenate(
        [c1, c2, c3, jnp.zeros((5, UNITS), jnp.float32)], axis=0)  # (8, 128)
    return dict(w1=w1, w2=w2, w3=w3, cpack=cpack)


def reference_forward_f32(x_ncw, p):
    """Pure-JAX f32 reference of the original module (eval-mode BN)."""
    x = x_ncw.reshape(x_ncw.shape[0], -1)

    def bn(h, g, b, m, v):
        return g * (h - m) * jax.lax.rsqrt(v + BN_EPS) + b

    h = x @ p["w1"] + p["b1"]
    h = jnp.maximum(bn(h, p["bn1_gamma"], p["bn1_beta"], p["bn1_mean"], p["bn1_var"]), 0.0)
    h = h @ p["w2"] + p["b2"]
    h = jnp.maximum(bn(h, p["bn2_gamma"], p["bn2_beta"], p["bn2_mean"], p["bn2_var"]), 0.0)
    h = h @ p["w3"] + p["b3"]
    return jnp.maximum(h, 0.0)


def reference_forward_bf16(x_ncw, fused):
    """Pure-JAX reference with the exact kernel numerics (bf16 operands, f32 accum)."""
    x = x_ncw.reshape(x_ncw.shape[0], -1).astype(jnp.bfloat16)
    c1 = fused["cpack"][0:1]
    c2 = fused["cpack"][1:2]
    c3 = fused["cpack"][2:3]
    h = jnp.dot(x, fused["w1"], preferred_element_type=jnp.float32) + c1
    h = jnp.maximum(h, 0.0)
    h = jnp.dot(h.astype(jnp.bfloat16), fused["w2"], preferred_element_type=jnp.float32) + c2
    h = jnp.maximum(h, 0.0)
    h = jnp.dot(h.astype(jnp.bfloat16), fused["w3"], preferred_element_type=jnp.float32) + c3
    return jnp.maximum(h, 0.0)


if __name__ == "__main__":
    key = jax.random.PRNGKey(0)
    k_in, k_par = jax.random.split(key)

    B = 10  # small batch: exercises the partial-last-block path (tb=8, grid=2)
    x = jax.random.normal(k_in, (B, 4, 600), jnp.float32)  # eye data: 4 ch x 600 samples
    raw = init_params(k_par)
    fused = fuse_params(raw)

    out = eyebase_forward(x, fused)
    out = jax.block_until_ready(out)
    assert out.shape == (B, UNITS)

    ref_bf16 = reference_forward_bf16(x, fused)   # same numerics as the kernel
    ref_f32 = reference_forward_f32(x, raw)       # original-module f32 semantics
    assert jnp.allclose(out, ref_bf16, atol=1e-2, rtol=1e-2), "mismatch vs bf16 reference"
    assert jnp.allclose(out, ref_f32, atol=7e-2, rtol=7e-2), "mismatch vs f32 reference"

    print("KERNEL_OK")
</pallas_src>

<mosaic_0001>
module attributes {stable_mosaic.version = 11 : i64} {
  func.func @eyebase_kernel(%arg0: i32, %arg1: memref<8x2400xf32, #tpu.memory_space<vmem>>, %arg2: memref<2400x128xbf16, #tpu.memory_space<vmem>>, %arg3: memref<128x128xbf16, #tpu.memory_space<vmem>>, %arg4: memref<128x128xbf16, #tpu.memory_space<vmem>>, %arg5: memref<8x128xf32, #tpu.memory_space<vmem>>, %arg6: memref<8x128xf32, #tpu.memory_space<vmem>>) attributes {dimension_semantics = [#tpu.dimension_semantics<parallel>], iteration_bounds = array<i64: 2>, scalar_prefetch = 0 : i64, scratch_operands = 0 : i64, tpu.core_type = #tpu.core_type<tc>, window_params = [{transform_indices = @transform_0, window_bounds = array<i64: 8, 2400>}, {pipeline_mode = #tpu.pipeline_mode<synchronous>, transform_indices = @transform_1, window_bounds = array<i64: 2400, 128>}, {pipeline_mode = #tpu.pipeline_mode<synchronous>, transform_indices = @transform_2, window_bounds = array<i64: 128, 128>}, {pipeline_mode = #tpu.pipeline_mode<synchronous>, transform_indices = @transform_3, window_bounds = array<i64: 128, 128>}, {pipeline_mode = #tpu.pipeline_mode<synchronous>, transform_indices = @transform_4, window_bounds = array<i64: 8, 128>}, {transform_indices = @transform_5, window_bounds = array<i64: 8, 128>}]} {
    %c0 = arith.constant 0 : index
    %c0_0 = arith.constant 0 : index
    %0 = vector.load %arg1[%c0, %c0_0] : memref<8x2400xf32, #tpu.memory_space<vmem>>, vector<8x2400xf32>
    %1 = arith.truncf %0 : vector<8x2400xf32> to vector<8x2400xbf16>
    %c0_1 = arith.constant 0 : index
    %c0_2 = arith.constant 0 : index
    %2 = vector.load %arg5[%c0_1, %c0_2] : memref<8x128xf32, #tpu.memory_space<vmem>>, vector<1x128xf32>
    %c1 = arith.constant 1 : index
    %c0_3 = arith.constant 0 : index
    %3 = vector.load %arg5[%c1, %c0_3] : memref<8x128xf32, #tpu.memory_space<vmem>>, vector<1x128xf32>
    %c2 = arith.constant 2 : index
    %c0_4 = arith.constant 0 : index
    %4 = vector.load %arg5[%c2, %c0_4] : memref<8x128xf32, #tpu.memory_space<vmem>>, vector<1x128xf32>
    %c0_5 = arith.constant 0 : index
    %c0_6 = arith.constant 0 : index
    %5 = vector.load %arg2[%c0_5, %c0_6] : memref<2400x128xbf16, #tpu.memory_space<vmem>>, vector<2400x128xbf16>
    %cst = arith.constant dense<0.000000e+00> : vector<8x128xf32>
    %6 = tpu.matmul %1, %5, %cst {dimension_numbers = #tpu.dot_dimension_numbers<[1], [0], [0], [1], [0, 0, 1, 1], [], []>} : vector<8x2400xbf16>, vector<2400x128xbf16>, vector<8x128xf32> -> vector<8x128xf32>
    %7 = vector.broadcast %2 : vector<1x128xf32> to vector<8x128xf32>
    %8 = arith.addf %6, %7 : vector<8x128xf32>
    %cst_7 = arith.constant 0.000000e+00 : f32
    %9 = vector.broadcast %cst_7 : f32 to vector<8x128xf32>
    %10 = arith.maximumf %8, %9 : vector<8x128xf32>
    %11 = arith.truncf %10 : vector<8x128xf32> to vector<8x128xbf16>
    %c0_8 = arith.constant 0 : index
    %c0_9 = arith.constant 0 : index
    %12 = vector.load %arg3[%c0_8, %c0_9] : memref<128x128xbf16, #tpu.memory_space<vmem>>, vector<128x128xbf16>
    %cst_10 = arith.constant dense<0.000000e+00> : vector<8x128xf32>
    %13 = tpu.matmul %11, %12, %cst_10 {dimension_numbers = #tpu.dot_dimension_numbers<[1], [0], [0], [1], [0, 0, 1, 1], [], []>} : vector<8x128xbf16>, vector<128x128xbf16>, vector<8x128xf32> -> vector<8x128xf32>
    %14 = vector.broadcast %3 : vector<1x128xf32> to vector<8x128xf32>
    %15 = arith.addf %13, %14 : vector<8x128xf32>
    %cst_11 = arith.constant 0.000000e+00 : f32
    %16 = vector.broadcast %cst_11 : f32 to vector<8x128xf32>
    %17 = arith.maximumf %15, %16 : vector<8x128xf32>
    %18 = arith.truncf %17 : vector<8x128xf32> to vector<8x128xbf16>
    %c0_12 = arith.constant 0 : index
    %c0_13 = arith.constant 0 : index
    %19 = vector.load %arg4[%c0_12, %c0_13] : memref<128x128xbf16, #tpu.memory_space<vmem>>, vector<128x128xbf16>
    %cst_14 = arith.constant dense<0.000000e+00> : vector<8x128xf32>
    %20 = tpu.matmul %18, %19, %cst_14 {dimension_numbers = #tpu.dot_dimension_numbers<[1], [0], [0], [1], [0, 0, 1, 1], [], []>} : vector<8x128xbf16>, vector<128x128xbf16>, vector<8x128xf32> -> vector<8x128xf32>
    %21 = vector.broadcast %4 : vector<1x128xf32> to vector<8x128xf32>
    %22 = arith.addf %20, %21 : vector<8x128xf32>
    %cst_15 = arith.constant 0.000000e+00 : f32
    %23 = vector.broadcast %cst_15 : f32 to vector<8x128xf32>
    %24 = arith.maximumf %22, %23 : vector<8x128xf32>
    %c0_16 = arith.constant 0 : index
    %c0_17 = arith.constant 0 : index
    %25 = vector.load %arg6[%c0_16, %c0_17] : memref<8x128xf32, #tpu.memory_space<vmem>>, vector<8x128xf32>
    tpu.vector_store %arg6[%c0_16, %c0_17], %24 {strides = array<i32>} : memref<8x128xf32, #tpu.memory_space<vmem>>, vector<8x128xf32>,
    return
  }
  func.func @transform_0(%arg0: i32) -> (i32, i32) {
    %c0_i32 = arith.constant 0 : i32
    %c0_i32_0 = arith.constant 0 : i32
    return %arg0, %c0_i32 : i32, i32
  }
  func.func @transform_1(%arg0: i32) -> (i32, i32) {
    %c0_i32 = arith.constant 0 : i32
    %c0_i32_0 = arith.constant 0 : i32
    %c0_i32_1 = arith.constant 0 : i32
    return %c0_i32, %c0_i32_0 : i32, i32
  }
  func.func @transform_2(%arg0: i32) -> (i32, i32) {
    %c0_i32 = arith.constant 0 : i32
    %c0_i32_0 = arith.constant 0 : i32
    %c0_i32_1 = arith.constant 0 : i32
    return %c0_i32, %c0_i32_0 : i32, i32
  }
  func.func @transform_3(%arg0: i32) -> (i32, i32) {
    %c0_i32 = arith.constant 0 : i32
    %c0_i32_0 = arith.constant 0 : i32
    %c0_i32_1 = arith.constant 0 : i32
    return %c0_i32, %c0_i32_0 : i32, i32
  }
  func.func @transform_4(%arg0: i32) -> (i32, i32) {
    %c0_i32 = arith.constant 0 : i32
    %c0_i32_0 = arith.constant 0 : i32
    %c0_i32_1 = arith.constant 0 : i32
    return %c0_i32, %c0_i32_0 : i32, i32
  }
  func.func @transform_5(%arg0: i32) -> (i32, i32) {
    %c0_i32 = arith.constant 0 : i32
    %c0_i32_0 = arith.constant 0 : i32
    return %arg0, %c0_i32 : i32, i32
  }
}

</mosaic_0001>

<bundles_post_ra>
// kernel: tpu_custom_call.1
= control target key start
LH: loop header
LB: loop body
LE: loop exit
PB: predicated region body
PF: predicated region fallthrough
CT: control target
= control target key end

     0   :  { %10 = vsyncpa [#allocation3], 0  ;;  %s3536_s0 = inlined_call_operand.hbm [shape: f32[10,2400], index: 0, kind: input, shape index: {}]   ;;  %s3537_s1 = inlined_call_operand.hbm [shape: bf16[2400,128], index: 1, kind: input, shape index: {}]   ;;  %s3538_s2 = inlined_call_operand.hbm [shape: bf16[128,128], index: 2, kind: input, shape index: {}]   ;;  %s3539_s3 = inlined_call_operand.hbm [shape: bf16[128,128], index: 3, kind: input, shape index: {}]   ;;  %s3540_s4 = inlined_call_operand.vmem [shape: f32[8,128], index: 4, kind: input, shape index: {}]   ;;  %s3541_s5 = inlined_call_operand.hbm [shape: f32[10,128], index: 5, kind: output, shape index: {}]  }
   0x1   :  { %12 = vsyncpa [#allocation3 + $0x1], 0 }
   0x2   :  { %13 = vsyncpa [#allocation6], 0 }
   0x3   :  { %14 = vsyncpa [#allocation9], 0 }
   0x4   :  { %15 = vsyncpa [#allocation4], 0 }
   0x5   :  { %17 = vsyncpa [#allocation4 + $0x1], 0  ;;  %s3214_s18 = smov 0   ;;  %s3216_s19 = smov 0  }
   0x6   :  { %s3218_s20 = smov 0   ;;  %s3220_s21 = smov 0  }
   0x7 LB: > { %s3235_s22 = sadd.s32 4294967295, %s3173_s21   ;;  %s2270_s23 = sadd.s32 4294967294, %s3173_s21   ;;  %s3173_s21 = sphi %s3220_s21, %s3564_s21   ;;  %s3169_s20 = sphi %s3218_s20, %s3563_s20   ;;  %s3165_s19 = sphi %s3216_s19, %s3562_s19   ;;  %s3161_s18 = sphi %s3214_s18, %s3561_s18  }
   0x8   : > { %p43_p0 = scmp.ne.s32.totalorder %s3165_s19, %s3161_s18  ;;  %p3542_p1 = scmp.eq.s32.totalorder %s3235_s22, 0 }
   0x9   : > { %p157_p3 = scmp.eq.s32.totalorder %s2270_s23, 1  ;;  %p2271_p5 = scmp.ge.s32.totalorder %s3173_s21, 1 }
   0xa   : > { %p3244_p4 = por %p3542_p1, %p43_p0  ;;  %p164_p7 = scmp.lt.s32.totalorder %s3173_s21, 3 }
   0xb   : > { %p3249_p6 = por %p157_p3, %p43_p0  ;;  %s3175_s27 = smov [#allocation5]  }
   0xc   : > { %s3545_s24 = scalar_select %p3244_p4, 1, 0 }
   0xd   : > { %s3546_s25 = scalar_select %p3249_p6, 1, 0 }
   0xe   : > { %p3254_p8 = pnand %p2271_p5, %p164_p7  ;;  %s176_s28 = sshll.u32 %s3175_s27, 4  ;;  %s3258_s28 = int_to_ptr.vmem [resolvable:$true] %s176_s28 }
   0xf   : > { %s3176_s30 = smov [#allocation7]   ;;  %s3177_s7 = smov [#allocation8]  }
  0x10   : > { %s3547_s26 = scalar_select %p3254_p8, 1, 0 }
  0x11   : > { %p2754_p9 = pneg %p3254_p8  ;;  %s189_s6 = sshll.u32 %s3176_s30, 4  ;;  %s3269_s6 = int_to_ptr.vmem [resolvable:$true] %s189_s6 }
  0x12   : > { %s3271_s8 = sshll.u32 %s3177_s7, 4  ;;  %s2985_s11 = scalar_lea.hbm %s3537_s1, 19200  ;;  %s203_s8 = int_to_ptr.vmem [resolvable:$true] %s3271_s8 }
  0x13   : > { %p3265_p11 = pnand %p2754_p9, %p3542_p1  ;;  %p2986_p12 = scmp.ne.s32.totalorder %s3537_s1, %s2985_s11 }
  0x14   : > { %p2992_p5 = scmp.lt.u32.totalorder %s2985_s11, %s3537_s1 }
  0x15   : > { %p3281_p13 = pneg %p3265_p11 }
  0x17   : > { %p2988_p0 = pnand %p3281_p13, %p2986_p12 }
  0x19   : > { %p2989_p3 = pneg %p2988_p0 }
  0x1b   : > { %p2994_p7 = pnand %p2992_p5, %p2989_p3 }
  0x1d   : > { %2997 = shalt.err (!%p2994_p7)
}
  0x1e   : > { %s2998_s17 = scalar_lea.vmem %s3258_s28, 19200  ;;  %p3006_p2 = scmp.lt.s32.totalorder %s3258_s28, %s3258_s28 }
  0x1f   : > { %p2999_p9 = scmp.ne.s32.totalorder %s3258_s28, %s2998_s17  ;;  %p3007_p6 = scmp.lt.s32.totalorder %s2998_s17, %s2998_s17 }
  0x21   : > { %p3001_p10 = pnand %p2999_p9, %p3281_p13  ;;  %p3008_p12 = por %p3007_p6, %p3006_p2 }
  0x23   : > { %p3002_p1 = pneg %p3001_p10 }
  0x25   : > { %p3009_p0 = pnand %p3008_p12, %p3002_p1 }
  0x27   : > { %3012 = shalt.err (!%p3009_p0)
}
  0x28   : > { %s3178_s23 = smov 64   ;;  %s3179_s27 = smov 4  }
  0x29   : > { %2757 = dma.hbm_to_vmem [thread:$0]  (!%p3265_p11), %s3537_s1, 19200, %s3258_s28, [#allocation6], %s3178_s23, %s3178_s23, %s3179_s27  }
  0x2a   : > { %s3013_s11 = scalar_lea.hbm %s3538_s2, 1024 }
  0x2b   : > { %p3014_p1 = scmp.ne.s32.totalorder %s3538_s2, %s3013_s11  ;;  %p3020_p10 = scmp.lt.u32.totalorder %s3013_s11, %s3538_s2 }
  0x2d   : > { %p3016_p2 = pnand %p3014_p1, %p3281_p13 }
  0x2f   : > { %p3017_p6 = pneg %p3016_p2 }
  0x31   : > { %p3022_p3 = pnand %p3020_p10, %p3017_p6 }
  0x33   : > { %3025 = shalt.err (!%p3022_p3)
}
  0x34   : > { %s3026_s28 = scalar_lea.vmem %s3269_s6, 1024  ;;  %p3034_p12 = scmp.lt.s32.totalorder %s3269_s6, %s3269_s6 }
  0x35   : > { %p3027_p5 = scmp.ne.s32.totalorder %s3269_s6, %s3026_s28  ;;  %p3035_p0 = scmp.lt.s32.totalorder %s3026_s28, %s3026_s28 }
  0x37   : > { %p3029_p7 = pnand %p3027_p5, %p3281_p13  ;;  %p3036_p1 = por %p3035_p0, %p3034_p12 }
  0x39   : > { %p3030_p9 = pneg %p3029_p7 }
  0x3b   : > { %p3037_p2 = pnand %p3036_p1, %p3030_p9 }
  0x3d   : > { %3040 = shalt.err (!%p3037_p2)
}
  0x3e   : > { %2760 = dma.hbm_to_vmem [thread:$0]  (!%p3265_p11), %s3538_s2, 1024, %s3269_s6, [#allocation6], %s3178_s23, %s3178_s23, %s3179_s27  }
  0x3f   : > { %s3041_s10 = scalar_lea.hbm %s3539_s3, 1024 }
  0x40   : > { %p3042_p6 = scmp.ne.s32.totalorder %s3539_s3, %s3041_s10  ;;  %p3048_p5 = scmp.lt.u32.totalorder %s3041_s10, %s3539_s3 }
  0x42   : > { %p3044_p10 = pnand %p3042_p6, %p3281_p13 }
  0x44   : > { %p3045_p3 = pneg %p3044_p10 }
  0x46   : > { %p3050_p7 = pnand %p3048_p5, %p3045_p3 }
  0x48   : > { %3053 = shalt.err (!%p3050_p7)
}
  0x49   : > { %s3054_s16 = scalar_lea.vmem %s203_s8, 1024  ;;  %p3062_p1 = scmp.lt.s32.totalorder %s203_s8, %s203_s8 }
  0x4a   : > { %p3055_p9 = scmp.ne.s32.totalorder %s203_s8, %s3054_s16  ;;  %p3063_p2 = scmp.lt.s32.totalorder %s3054_s16, %s3054_s16 }
  0x4c   : > { %p3057_p12 = pnand %p3055_p9, %p3281_p13  ;;  %p3064_p4 = por %p3063_p2, %p3062_p1 }
  0x4e   : > { %p3058_p0 = pneg %p3057_p12 }
  0x50   : > { %p3065_p8 = pnand %p3064_p4, %p3058_p0 }
  0x52   : > { %3068 = shalt.err (!%p3065_p8)
}
  0x53   : > { %2763 = dma.hbm_to_vmem [thread:$0]  (!%p3265_p11), %s3539_s3, 1024, %s203_s8, [#allocation9], %s3178_s23, %s3178_s23, %s3179_s27  }
  0x54   : > { %s3354_s14 = sadd.s32 1, %s3173_s21   ;;  %s30_s17 = sadd.s32 1, %s3169_s20 }
  0x55   : > { %s27_s29 = ssub.s32 %s3173_s21, %s3354_s14  ;;  %p37_p8 = scmp.ne.s32.totalorder %s3169_s20, %s3165_s19 }
  0x56   : > { %p28_p4 = scmp.eq.s32.totalorder %s27_s29, 0  ;;  %p38_p13 = scmp.eq.s32.totalorder %s3173_s21, 0 }
  0x57   : > { %p2775_p6 = scmp.lt.s32.totalorder %s3173_s21, 2  ;;  %p3550_p3 = scmp.eq.s32.totalorder %s3235_s22, 1 }
  0x58   : > { %s3364_s30 = scalar_select %p28_p4, %s3169_s20, %s30_s17  }
  0x59   : > { %p39_p10 = por %p38_p13, %p37_p8  ;;  %p3368_p5 = por %p3550_p3, %p37_p8 }
  0x5a   : > { %s219_s9 = sand.u32 1, %s3169_s20   ;;  %s2736_s10 = smul.u32 2432, %s3173_s21 }
  0x5b   : > { %s2735_s8 = smul.u32 152, %s219_s9  ;;  %p3374_p11 = pnand %p2775_p6, %p39_p10 }
  0x5c   : > { %s3381_s12 = scalar_lea.hbm %s3536_s0, %s2736_s10  ;;  %s220_s16 = scalar_lea.sflag [#allocation3], %s219_s9 }
  0x5d   : > { %s223_s13 = scalar_lea.vmem [#allocation2], %s2735_s8  ;;  %s3069_s6 = scalar_lea.hbm %s3381_s12, 2432 }
  0x5e   : > { %s231_s15 = sshll.u32 %s223_s13, 4  ;;  %p3070_p7 = scmp.ne.s32.totalorder %s3381_s12, %s3069_s6  ;;  %s3383_s15 = int_to_ptr.vmem [resolvable:$true] %s231_s15 }
  0x5f   : > { %p3071_p9 = pneg %p3374_p11  ;;  %s3074_s17 = scalar_lea.hbm %s3536_s0, 4864 }
  0x60   : > { %p3075_p1 = scmp.lt.u32.totalorder %s3381_s12, %s3536_s0  ;;  %p3076_p2 = scmp.lt.u32.totalorder %s3074_s17, %s3069_s6 }
  0x61   : > { %p3072_p12 = pnand %p3071_p9, %p3070_p7  ;;  %p3078_p8 = scmp.lt.u32.totalorder %s3069_s6, %s3381_s12 }
  0x62   : > { %p3077_p4 = por %p3076_p2, %p3075_p1 }
  0x63   : > { %p3073_p0 = pneg %p3072_p12 }
  0x64   : > { %p3079_p13 = por %p3078_p8, %p3077_p4 }
  0x66   : > { %p3080_p6 = pnand %p3079_p13, %p3073_p0 }
  0x68   : > { %3083 = shalt.err (!%p3080_p6)
}
  0x69   : > { %s3084_s9 = scalar_lea.vmem %s3383_s15, 2432  ;;  %s3180_s8 = smov [#allocation2]  }
  0x6a   : > { %p3085_p10 = scmp.ne.s32.totalorder %s3383_s15, %s3084_s9  ;;  %s3089_s11 = sshll.u32 %s3180_s8, 4  ;;  %s3090_s11 = int_to_ptr.vmem [resolvable:$false] %s3089_s11 }
  0x6b   : > { %s3091_s13 = scalar_lea.vmem %s3090_s11, 4864  ;;  %p3092_p12 = scmp.lt.s32.totalorder %s3383_s15, %s3090_s11 }
  0x6c   : > { %p3087_p3 = pnand %p3085_p10, %p3071_p9  ;;  %p3093_p1 = scmp.lt.s32.totalorder %s3091_s13, %s3084_s9 }
  0x6e   : > { %p3088_p7 = pneg %p3087_p3  ;;  %p3094_p2 = por %p3093_p1, %p3092_p12 }
  0x70   : > { %p3095_p4 = pnand %p3094_p2, %p3088_p7 }
  0x72   : > { %3098 = shalt.err (!%p3095_p4)
}
  0x73   : > { %2767 = dma.hbm_to_vmem [thread:$0]  (!%p3374_p11), %s3381_s12, 2432, %s3383_s15, %s220_s16  }
  0x74   : > { %p3553_p0 = scmp.ne.s32.totalorder %s3547_s26, 0 }
  0x75   : > { %s3413_s6 = sand.u32 (!%p3553_p0), 1, %s3165_s19   ;;  %p3554_p9 = scmp.ne.s32.totalorder (!%p3553_p0), %s3545_s24, 0 }
  0x76   : > { %240 = sbr.rel (%p3553_p0) target bundleno = 965 (0x3c5), region = 40  ;;  %s243_s29 = scalar_lea.sflag (!%p3553_p0), [#allocation3], %s3413_s6 }
  0x77   : > { %s2737_s28 = smul.u32 (!%p3553_p0), 152, %s3413_s6 }
  0x79   : > { %s3417_s17 = scalar_lea.vmem (!%p3553_p0), [#allocation2], %s2737_s28 }
  0x7d   : > { %3144 = dma.done.wait (%p3554_p9), %s243_s29, 2432  }
  0x7e   : > { %3146 = vsyncadd (%p3554_p9), %s243_s29, 4294964864  ;;  %p3555_p11 = scmp.eq.s32.totalorder %s3235_s22, 0 }
  0x80   : > { %3148 = dma.done.wait (%p3555_p11), [#allocation6], 20224   ;;  %p3556_p8 = pmov %p3555_p11 }
  0x82   : > { %3150 = vsyncadd (%p3556_p8), [#allocation6], 4294947072  ;;  %p3557_p13 = pmov %p3556_p8 }
  0x83   : > { %p3558_p6 = pmov %p3556_p8 }
  0x84   : > { %3152 = dma.done.wait (%p3557_p13), [#allocation9], 1024  }
  0x85   : > { %3154 = vsyncadd (%p3558_p6), [#allocation9], 4294966272  ;;  %v2819_v0 = vld [vmem:[#allocation5 + $0x40] sm:$0xff]   ;;  %v2823_v4 = vld [vmem:[#allocation5 + $0x48] sm:$0xff]   ;;  %vm3182_vm0 = vmmov 0   ;;  %vm1531_vm1 = vcmask 785408  }
  0x86   : > { %v2820_v1 = vld [vmem:[#allocation5] sm:$0xff]   ;;  %2456 = vmatprep.subr.bf16.mxu0 %v2819_v0  ;;  %v2824_v5 = vld [vmem:[#allocation5 + $0x8] sm:$0xff]   ;;  %v2827_v8 = vld [vmem:[#allocation5 + $0x50] sm:$0xff]   ;;  %s2281_s15 = sshll.u32 %s3413_s6, 3  ;;  %s2453_s27 = sshll.u32 %s3235_s22, 7 }
  0x87   : > { %v2821_v2 = vld [vmem:[#allocation5 + $0xc0] sm:$0xff]   ;;  %2457 = vmatpush3.bf16.msra.mxu0 %v2820_v1  ;;  %v2825_v6 = vld [vmem:[#allocation5 + $0xc8] sm:$0xff]   ;;  %v2828_v9 = vld [vmem:[#allocation5 + $0x10] sm:$0xff]   ;;  %s284_s9 = scalar_lea.vmem [#allocation10], %s2281_s15  ;;  %s3492_s28 = scalar_lea.hbm %s3541_s5, %s2453_s27 }
  0x88   : > { %v2822_v3 = vld [vmem:[#allocation5 + $0x80] sm:$0xff]   ;;  %2478 = vmatprep.subr.bf16.mxu1 %v2821_v2  ;;  %2458 = vmatprep.subr.bf16.mxu0 %v2823_v4  ;;  %v2826_v7 = vld [vmem:[#allocation5 + $0x88] sm:$0xff]   ;;  %v2829_v10 = vld [vmem:[#allocation5 + $0xd0] sm:$0xff]   ;;  %s2171_s8 = sshll.u32 %s284_s9, 4  ;;  %s2158_s29 = scalar_lea.sflag [#allocation4], %s3413_s6  ;;  %s3494_s8 = int_to_ptr.vmem [resolvable:$true] %s2171_s8 }
  0x89   : > { %2479 = vmatpush3.bf16.msra.mxu1 %v2822_v3  ;;  %v2830_v11 = vld [vmem:[#allocation5 + $0x90] sm:$0xff]   ;;  %v2831_v12 = vld [vmem:[#allocation5 + $0x58] sm:$0xff]   ;;  %v2835_v16 = vld [vmem:[#allocation5 + $0x60] sm:$0xff]   ;;  %s3099_s22 = scalar_lea.vmem %s3494_s8, 128 }
  0x8a   : > { %2480 = vmatprep.subr.bf16.mxu1 %v2825_v6  ;;  %v2832_v13 = vld [vmem:[#allocation5 + $0x18] sm:$0xff]   ;;  %v2836_v17 = vld [vmem:[#allocation5 + $0x20] sm:$0xff]   ;;  %v2839_v20 = vld [vmem:[#allocation5 + $0x68] sm:$0xff]   ;;  %p3100_p10 = scmp.ne.s32.totalorder %s3494_s8, %s3099_s22 }
  0x8b   : > { %2459 = vmatpush3.bf16.msra.mxu0 %v2824_v5  ;;  %v2833_v14 = vld [vmem:[#allocation5 + $0xd8] sm:$0xff]   ;;  %v2837_v18 = vld [vmem:[#allocation5 + $0xe0] sm:$0xff]   ;;  %v2840_v21 = vld [vmem:[#allocation5 + $0x28] sm:$0xff]  }
  0x8c   : > { %2460 = vmatprep.subr.bf16.mxu0 %v2827_v8  ;;  %v2834_v15 = vld [vmem:[#allocation5 + $0x98] sm:$0xff]   ;;  %v2838_v19 = vld [vmem:[#allocation5 + $0xa0] sm:$0xff]   ;;  %v2841_v22 = vld [vmem:[#allocation5 + $0xe8] sm:$0xff]   ;;  %p3101_p3 = pnand %p3100_p10, %p3368_p5 }
  0x8d   : > { %2481 = vmatpush3.bf16.msra.mxu1 %v2826_v7  ;;  %v2842_v23 = vld [vmem:[#allocation5 + $0xa8] sm:$0xff]   ;;  %v2843_v24 = vld [vmem:[#allocation5 + $0x70] sm:$0xff]   ;;  %v2847_v28 = vld [vmem:[#allocation5 + $0x78] sm:$0xff]  }
  0x8e   : > { %2482 = vmatprep.subr.bf16.mxu1 %v2829_v10  ;;  %v2844_v25 = vld [vmem:[#allocation5 + $0x30] sm:$0xff]   ;;  %v2848_v29 = vld [vmem:[#allocation5 + $0x38] sm:$0xff]   ;;  %v2851_v36 = vld [vmem:[#allocation5 + $0x140] sm:$0xff]   ;;  %p3102_p7 = pneg %p3101_p3 }
  0x8f   : > { %2461 = vmatpush3.bf16.msra.mxu0 %v2828_v9  ;;  %v2845_v26 = vld [vmem:[#allocation5 + $0xf0] sm:$0xff]   ;;  %v2849_v30 = vld [vmem:[#allocation5 + $0xf8] sm:$0xff]   ;;  %v289_v37 = vld [vmem:[%s3417_s17 + $0x18] sm:$0xff] }
  0x90   : > { %2462 = vmatprep.subr.bf16.mxu0 %v2831_v12  ;;  %v2846_v27 = vld [vmem:[#allocation5 + $0xb0] sm:$0xff]   ;;  %v2850_v33 = vld [vmem:[#allocation5 + $0xb8] sm:$0xff]   ;;  %v308_v38 = vpack.c.bf16 %v289_v37, %v289_v37  ;;  %v2852_v39 = vld [vmem:[#allocation5 + $0x100] sm:$0xff]  }
  0x91   : > { %2483 = vmatpush3.bf16.msra.mxu1 %v2830_v11  ;;  %v287_v31 = vld [vmem:[%s3417_s17 + $0x8] sm:$0xff]  ;;  %v286_v34 = vld [vmem:[%s3417_s17] sm:$0xff]  ;;  %v288_v40 = vld [vmem:[%s3417_s17 + $0x10] sm:$0xff] }
  0x92   : > { %2484 = vmatprep.subr.bf16.mxu1 %v2833_v14  ;;  %v306_v32 = vpack.c.bf16 %v287_v31, %v287_v31  ;;  %v305_v35 = vpack.c.bf16 %v286_v34, %v286_v34  ;;  %1607 = vmatprep.mubr.bf16.mxu1 %v308_v38  ;;  %v307_v41 = vpack.c.bf16 %v288_v40, %v288_v40  ;;  %v2853_v42 = vld [vmem:[#allocation5 + $0x1c0] sm:$0xff]   ;;  %v2855_v44 = vld [vmem:[#allocation5 + $0x148] sm:$0xff]   ;;  %v2859_v48 = vld [vmem:[#allocation5 + $0x150] sm:$0xff]  }
  0x93   : > { %2463 = vmatpush3.bf16.msra.mxu0 %v2832_v13  ;;  %v2854_v43 = vld [vmem:[#allocation5 + $0x180] sm:$0xff]   ;;  %v2856_v45 = vld [vmem:[#allocation5 + $0x108] sm:$0xff]   ;;  %v2860_v49 = vld [vmem:[#allocation5 + $0x110] sm:$0xff]  }
  0x94   : > { %2464 = vmatprep.subr.bf16.mxu0 %v2835_v16  ;;  %1567 = vmatprep.mubr.bf16.mxu0 %v306_v32  ;;  %v2857_v46 = vld [vmem:[#allocation5 + $0x1c8] sm:$0xff]   ;;  %v2861_v50 = vld [vmem:[#allocation5 + $0x1d0] sm:$0xff]   ;;  %v2863_v52 = vld [vmem:[#allocation5 + $0x158] sm:$0xff]  }
  0x95   : > { %2485 = vmatpush3.bf16.msra.mxu1 %v2834_v15  ;;  %v2858_v47 = vld [vmem:[#allocation5 + $0x188] sm:$0xff]   ;;  %v2862_v51 = vld [vmem:[#allocation5 + $0x190] sm:$0xff]   ;;  %v2864_v53 = vld [vmem:[#allocation5 + $0x118] sm:$0xff]  }
  0x96   : > { %2486 = vmatprep.subr.bf16.mxu1 %v2837_v18  ;;  %v2865_v54 = vld [vmem:[#allocation5 + $0x1d8] sm:$0xff]   ;;  %v2867_v56 = vld [vmem:[#allocation5 + $0x160] sm:$0xff]   ;;  %v2871_v60 = vld [vmem:[#allocation5 + $0x168] sm:$0xff]  }
  0x97   : > { %2465 = vmatpush3.bf16.msra.mxu0 %v2836_v17  ;;  %v2866_v55 = vld [vmem:[#allocation5 + $0x198] sm:$0xff]   ;;  %v2868_v57 = vld [vmem:[#allocation5 + $0x120] sm:$0xff]   ;;  %v2872_v61 = vld [vmem:[#allocation5 + $0x128] sm:$0xff]  }
  0x98   : > { %2466 = vmatprep.subr.bf16.mxu0 %v2839_v20  ;;  %v2869_v58 = vld [vmem:[#allocation5 + $0x1e0] sm:$0xff]   ;;  %v2873_v62 = vld [vmem:[#allocation5 + $0x1e8] sm:$0xff]   ;;  %v2875_v0 = vld [vmem:[#allocation5 + $0x170] sm:$0xff]  }
  0x99   : > { %2487 = vmatpush3.bf16.msra.mxu1 %v2838_v19  ;;  %v2870_v59 = vld [vmem:[#allocation5 + $0x1a0] sm:$0xff]   ;;  %v2874_v63 = vld [vmem:[#allocation5 + $0x1a8] sm:$0xff]   ;;  %v2876_v1 = vld [vmem:[#allocation5 + $0x130] sm:$0xff]  }
  0x9a   : > { %2488 = vmatprep.subr.bf16.mxu1 %v2841_v22  ;;  %v2877_v2 = vld [vmem:[#allocation5 + $0x1f0] sm:$0xff]   ;;  %v2879_v4 = vld [vmem:[#allocation5 + $0x178] sm:$0xff]   ;;  %v2883_v12 = vld [vmem:[#allocation5 + $0x240] sm:$0xff]  }
  0x9b   : > { %2467 = vmatpush3.bf16.msra.mxu0 %v2840_v21  ;;  %v2878_v3 = vld [vmem:[#allocation5 + $0x1b0] sm:$0xff]   ;;  %v2880_v5 = vld [vmem:[#allocation5 + $0x138] sm:$0xff]   ;;  %v293_v13 = vld [vmem:[%s3417_s17 + $0x38] sm:$0xff] }
  0x9c   : > { %2468 = vmatprep.subr.bf16.mxu0 %v2843_v24  ;;  %v2881_v6 = vld [vmem:[#allocation5 + $0x1f8] sm:$0xff]   ;;  %v290_v10 = vld [vmem:[%s3417_s17 + $0x20] sm:$0xff]  ;;  %v312_v14 = vpack.c.bf16 %v293_v13, %v293_v13  ;;  %v2884_v15 = vld [vmem:[#allocation5 + $0x200] sm:$0xff]  }
  0x9d   : > { %2489 = vmatpush3.bf16.msra.mxu1 %v2842_v23  ;;  %v291_v7 = vld [vmem:[%s3417_s17 + $0x28] sm:$0xff]  ;;  %v309_v11 = vpack.c.bf16 %v290_v10, %v290_v10  ;;  %v292_v16 = vld [vmem:[%s3417_s17 + $0x30] sm:$0xff]  ;;  %v2887_v20 = vld [vmem:[#allocation5 + $0x248] sm:$0xff]  }
  0x9e   : > { %2490 = vmatprep.subr.bf16.mxu1 %v2845_v26  ;;  %v310_v8 = vpack.c.bf16 %v291_v7, %v291_v7  ;;  %v2882_v9 = vld [vmem:[#allocation5 + $0x1b8] sm:$0xff]   ;;  %v311_v17 = vpack.c.bf16 %v292_v16, %v292_v16  ;;  %v2885_v18 = vld [vmem:[#allocation5 + $0x2c0] sm:$0xff]   ;;  %v2888_v21 = vld [vmem:[#allocation5 + $0x208] sm:$0xff]  }
  0x9f   : > { %2469 = vmatpush3.bf16.msra.mxu0 %v2844_v25  ;;  %v2886_v19 = vld [vmem:[#allocation5 + $0x280] sm:$0xff]   ;;  %v2889_v22 = vld [vmem:[#allocation5 + $0x2c8] sm:$0xff]   ;;  %v2891_v24 = vld [vmem:[#allocation5 + $0x250] sm:$0xff]  }
  0xa0   : > { %2470 = vmatprep.subr.bf16.mxu0 %v2847_v28  ;;  %v2890_v23 = vld [vmem:[#allocation5 + $0x288] sm:$0xff]   ;;  %v2892_v25 = vld [vmem:[#allocation5 + $0x210] sm:$0xff]   ;;  %v2895_v28 = vld [vmem:[#allocation5 + $0x258] sm:$0xff]  }
  0xa1   : > { %2491 = vmatpush3.bf16.msra.mxu1 %v2846_v27  ;;  %v2893_v26 = vld [vmem:[#allocation5 + $0x2d0] sm:$0xff]   ;;  %v2898_v31 = vld [vmem:[#allocation5 + $0x298] sm:$0xff]   ;;  %v2899_v32 = vld [vmem:[#allocation5 + $0x260] sm:$0xff]  }
  0xa2   : > { %2492 = vmatprep.subr.bf16.mxu1 %v2849_v30  ;;  %v2894_v27 = vld [vmem:[#allocation5 + $0x290] sm:$0xff]   ;;  %v2897_v30 = vld [vmem:[#allocation5 + $0x2d8] sm:$0xff]   ;;  %v2901_v34 = vld [vmem:[#allocation5 + $0x2e0] sm:$0xff]  }
  0xa3   : > { %2471 = vmatpush3.bf16.msra.mxu0 %v2848_v29  ;;  %v2896_v29 = vld [vmem:[#allocation5 + $0x218] sm:$0xff]   ;;  %v2904_v37 = vld [vmem:[#allocation5 + $0x228] sm:$0xff]   ;;  %v2907_v40 = vld [vmem:[#allocation5 + $0x270] sm:$0xff]  }
  0xa4   : > { %2500 = vmatprep.subr.bf16.mxu0 %v2851_v36  ;;  %v2903_v36 = vld [vmem:[#allocation5 + $0x268] sm:$0xff]   ;;  %v2930_v7 = vld [vmem:[#allocation5 + $0x398] sm:$0xff]   ;;  %v2933_v10 = vld [vmem:[#allocation5 + $0x3e0] sm:$0xff]  }
  0xa5   : > { %2493 = vmatpush3.bf16.msra.mxu1 %v2850_v33  ;;  %v2900_v33 = vld [vmem:[#allocation5 + $0x220] sm:$0xff]   ;;  %v2905_v38 = vld [vmem:[#allocation5 + $0x2e8] sm:$0xff]   ;;  %v2939_v16 = vld [vmem:[#allocation5 + $0x370] sm:$0xff]  }
  0xa6   : > { %1568 = vmatmul.mubr.bf16.vlgmr.msra.gmra.mrb[0].mxu0 %v305_v35  ;;  %2522 = vmatprep.subr.bf16.mxu1 %v2853_v42  ;;  %v2902_v35 = vld [vmem:[#allocation5 + $0x2a0] sm:$0xff]   ;;  %v2909_v42 = vld [vmem:[#allocation5 + $0x2f0] sm:$0xff]   ;;  %v2936_v13 = vld [vmem:[#allocation5 + $0x328] sm:$0xff]  }
  0xa7   : > { %2501 = vmatpush3.bf16.msra.mxu0 %v2852_v39  ;;  %1647 = vmatprep.mubr.bf16.mxu0 %v310_v8  ;;  %v2906_v39 = vld [vmem:[#allocation5 + $0x2a8] sm:$0xff]   ;;  %v2931_v8 = vld [vmem:[#allocation5 + $0x360] sm:$0xff]  }
  0xa8   : > { %1608 = vmatmul.mubr.bf16.vlgmr.msra.gmra.mrb[0].mxu1 %v307_v41  ;;  %2502 = vmatprep.subr.bf16.mxu0 %v2855_v44  ;;  %v2908_v41 = vld [vmem:[#allocation5 + $0x230] sm:$0xff]   ;;  %v2911_v44 = vld [vmem:[#allocation5 + $0x278] sm:$0xff]  }
  0xa9   : > { %2523 = vmatpush3.bf16.msra.mxu1 %v2854_v43  ;;  %1687 = vmatprep.mubr.bf16.mxu1 %v312_v14  ;;  %v2910_v43 = vld [vmem:[#allocation5 + $0x2b0] sm:$0xff]   ;;  %v2937_v14 = vld [vmem:[#allocation5 + $0x3e8] sm:$0xff]  }
  0xaa   : > { %2524 = vmatprep.subr.bf16.mxu1 %v2857_v46  ;;  %v2913_v46 = vld [vmem:[#allocation5 + $0x2f8] sm:$0xff]  }
  0xab   : > { %2503 = vmatpush3.bf16.msra.mxu0 %v2856_v45  ;;  %v2912_v45 = vld [vmem:[#allocation5 + $0x238] sm:$0xff]  }
  0xac   : > { %2504 = vmatprep.subr.bf16.mxu0 %v2859_v48 }
  0xad   : > { %2525 = vmatpush3.bf16.msra.mxu1 %v2858_v47  ;;  %v295_v47 = vld [vmem:[%s3417_s17 + $0x48] sm:$0xff] }
  0xae   : > { %2526 = vmatprep.subr.bf16.mxu1 %v2861_v50  ;;  %v314_v48 = vpack.c.bf16 %v295_v47, %v295_v47  ;;  %v294_v50 = vld [vmem:[%s3417_s17 + $0x40] sm:$0xff]  ;;  %v2962_v47 = vld [vmem:[#allocation5 + $0x498] sm:$0xff]  }
  0xaf   : > { %2505 = vmatpush3.bf16.msra.mxu0 %v2860_v49  ;;  %v2914_v49 = vld [vmem:[#allocation5 + $0x2b8] sm:$0xff]  }
  0xb0   : > { %2506 = vmatprep.subr.bf16.mxu0 %v2863_v52  ;;  %v2915_v52 = vld [vmem:[#allocation5 + $0x340] sm:$0xff]  }
  0xb1   : > { %2527 = vmatpush3.bf16.msra.mxu1 %v2862_v51  ;;  %v313_v51 = vpack.c.bf16 %v294_v50, %v294_v50  ;;  %v2965_v50 = vld [vmem:[#allocation5 + $0x4a0] sm:$0xff]  }
  0xb2   : > { %2528 = vmatprep.subr.bf16.mxu1 %v2865_v54 }
  0xb3   : > { %2507 = vmatpush3.bf16.msra.mxu0 %v2864_v53  ;;  %v297_v53 = vld [vmem:[%s3417_s17 + $0x58] sm:$0xff] }
  0xb4   : > { %2508 = vmatprep.subr.bf16.mxu0 %v2867_v56  ;;  %v316_v54 = vpack.c.bf16 %v297_v53, %v297_v53  ;;  %v296_v56 = vld [vmem:[%s3417_s17 + $0x50] sm:$0xff] }
  0xb5   : > { %2529 = vmatpush3.bf16.msra.mxu1 %v2866_v55  ;;  %v2916_v55 = vld [vmem:[#allocation5 + $0x300] sm:$0xff]   ;;  %v2966_v53 = vld [vmem:[#allocation5 + $0x478] sm:$0xff]  }
  0xb6   : > { %2530 = vmatprep.subr.bf16.mxu1 %v2869_v58  ;;  %v2917_v58 = vld [vmem:[#allocation5 + $0x3c0] sm:$0xff]  }
  0xb7   : > { %2509 = vmatpush3.bf16.msra.mxu0 %v2868_v57  ;;  %v315_v57 = vpack.c.bf16 %v296_v56, %v296_v56  ;;  %v304_v56 = vld [vmem:[%s3417_s17 + $0x90] sm:$0xff] }
  0xb8   : > { %2510 = vmatprep.subr.bf16.mxu0 %v2871_v60  ;;  %v2919_v60 = vld [vmem:[#allocation5 + $0x348] sm:$0xff]  }
  0xb9   : > { %2531 = vmatpush3.bf16.msra.mxu1 %v2870_v59  ;;  %v2918_v59 = vld [vmem:[#allocation5 + $0x380] sm:$0xff]  }
  0xba   : > { %2532 = vmatprep.subr.bf16.mxu1 %v2873_v62  ;;  %v2921_v62 = vld [vmem:[#allocation5 + $0x3c8] sm:$0xff]  }
  0xbb   : > { %2511 = vmatpush3.bf16.msra.mxu0 %v2872_v61  ;;  %v2920_v61 = vld [vmem:[#allocation5 + $0x308] sm:$0xff]  }
  0xbc   : > { %2512 = vmatprep.subr.bf16.mxu0 %v2875_v0  ;;  %v2923_v0 = vld [vmem:[#allocation5 + $0x350] sm:$0xff]  }
  0xbd   : > { %2533 = vmatpush3.bf16.msra.mxu1 %v2874_v63  ;;  %v2922_v63 = vld [vmem:[#allocation5 + $0x388] sm:$0xff]  }
  0xbe   : > { %2534 = vmatprep.subr.bf16.mxu1 %v2877_v2  ;;  %v2925_v2 = vld [vmem:[#allocation5 + $0x3d0] sm:$0xff]  }
  0xbf   : > { %2513 = vmatpush3.bf16.msra.mxu0 %v2876_v1  ;;  %v2924_v1 = vld [vmem:[#allocation5 + $0x310] sm:$0xff]  }
  0xc0   : > { %2514 = vmatprep.subr.bf16.mxu0 %v2879_v4  ;;  %v2927_v4 = vld [vmem:[#allocation5 + $0x358] sm:$0xff]  }
  0xc1   : > { %2535 = vmatpush3.bf16.msra.mxu1 %v2878_v3  ;;  %v2926_v3 = vld [vmem:[#allocation5 + $0x390] sm:$0xff]  }
  0xc2   : > { %2536 = vmatprep.subr.bf16.mxu1 %v2881_v6  ;;  %v2929_v6 = vld [vmem:[#allocation5 + $0x3d8] sm:$0xff]  }
  0xc3   : > { %2515 = vmatpush3.bf16.msra.mxu0 %v2880_v5  ;;  %v2928_v5 = vld [vmem:[#allocation5 + $0x318] sm:$0xff]  }
  0xc4   : > { %2544 = vmatprep.subr.bf16.mxu0 %v2883_v12  ;;  %v2935_v12 = vld [vmem:[#allocation5 + $0x368] sm:$0xff]  }
  0xc5   : > { %2537 = vmatpush3.bf16.msra.mxu1 %v2882_v9  ;;  %v2932_v9 = vld [vmem:[#allocation5 + $0x320] sm:$0xff]  }
  0xc6   : > { %1648 = vmatmul.mubr.bf16.vlgmr.msra.gmra.mrb[4].mxu0 %v309_v11  ;;  %2566 = vmatprep.subr.bf16.mxu1 %v2885_v18  ;;  %v2934_v11 = vld [vmem:[#allocation5 + $0x3a0] sm:$0xff]   ;;  %v2941_v18 = vld [vmem:[#allocation5 + $0x3f0] sm:$0xff]  }
  0xc7   : > { %2545 = vmatpush3.bf16.msra.mxu0 %v2884_v15  ;;  %1727 = vmatprep.mubr.bf16.mxu0 %v314_v48  ;;  %v2938_v15 = vld [vmem:[#allocation5 + $0x3a8] sm:$0xff]  }
  0xc8   : > { %1688 = vmatmul.mubr.bf16.vlgmr.msra.gmra.mrb[4].mxu1 %v311_v17  ;;  %2546 = vmatprep.subr.bf16.mxu0 %v2887_v20  ;;  %v2940_v17 = vld [vmem:[#allocation5 + $0x330] sm:$0xff]   ;;  %v2943_v20 = vld [vmem:[#allocation5 + $0x378] sm:$0xff]   ;;  %v2961_v48 = vld [vmem:[#allocation5 + $0x428] sm:$0xff]  }
  0xc9   : > { %2567 = vmatpush3.bf16.msra.mxu1 %v2886_v19  ;;  %1767 = vmatprep.mubr.bf16.mxu1 %v316_v54  ;;  %v2942_v19 = vld [vmem:[#allocation5 + $0x3b0] sm:$0xff]  }
  0xca   : > { %2568 = vmatprep.subr.bf16.mxu1 %v2889_v22  ;;  %v2945_v22 = vld [vmem:[#allocation5 + $0x3f8] sm:$0xff]  }
  0xcb   : > { %2547 = vmatpush3.bf16.msra.mxu0 %v2888_v21  ;;  %v2944_v21 = vld [vmem:[#allocation5 + $0x338] sm:$0xff]  }
  0xcc   : > { %2548 = vmatprep.subr.bf16.mxu0 %v2891_v24 }
  0xcd   : > { %2569 = vmatpush3.bf16.msra.mxu1 %v2890_v23  ;;  %v299_v23 = vld [vmem:[%s3417_s17 + $0x68] sm:$0xff] }
  0xce   : > { %2570 = vmatprep.subr.bf16.mxu1 %v2893_v26  ;;  %v318_v24 = vpack.c.bf16 %v299_v23, %v299_v23  ;;  %v298_v26 = vld [vmem:[%s3417_s17 + $0x60] sm:$0xff] }
  0xcf   : > { %2549 = vmatpush3.bf16.msra.mxu0 %v2892_v25  ;;  %v2946_v25 = vld [vmem:[#allocation5 + $0x3b8] sm:$0xff]  }
  0xd0   : > { %2550 = vmatprep.subr.bf16.mxu0 %v2895_v28  ;;  %v2947_v28 = vld [vmem:[#allocation5 + $0x440] sm:$0xff]  }
  0xd1   : > { %2571 = vmatpush3.bf16.msra.mxu1 %v2894_v27  ;;  %v317_v27 = vpack.c.bf16 %v298_v26, %v298_v26 }
  0xd2   : > { %2572 = vmatprep.subr.bf16.mxu1 %v2897_v30 }
  0xd3   : > { %2551 = vmatpush3.bf16.msra.mxu0 %v2896_v29  ;;  %v301_v29 = vld [vmem:[%s3417_s17 + $0x78] sm:$0xff] }
  0xd4   : > { %2552 = vmatprep.subr.bf16.mxu0 %v2899_v32  ;;  %v320_v30 = vpack.c.bf16 %v301_v29, %v301_v29  ;;  %v300_v32 = vld [vmem:[%s3417_s17 + $0x70] sm:$0xff] }
  0xd5   : > { %2573 = vmatpush3.bf16.msra.mxu1 %v2898_v31  ;;  %v2948_v31 = vld [vmem:[#allocation5 + $0x400] sm:$0xff]  }
  0xd6   : > { %2574 = vmatprep.subr.bf16.mxu1 %v2901_v34  ;;  %v2949_v34 = vld [vmem:[#allocation5 + $0x448] sm:$0xff]  }
  0xd7   : > { %2553 = vmatpush3.bf16.msra.mxu0 %v2900_v33  ;;  %v319_v33 = vpack.c.bf16 %v300_v32, %v300_v32 }
  0xd8   : > { %2554 = vmatprep.subr.bf16.mxu0 %v2903_v36  ;;  %v3181_v36 = vmov 0.0  }
  0xd9   : > { %2575 = vmatpush3.bf16.msra.mxu1 %v2902_v35  ;;  %v2950_v35 = vld [vmem:[#allocation5 + $0x408] sm:$0xff]  }
  0xda   : > { %2576 = vmatprep.subr.bf16.mxu1 %v2905_v38  ;;  %v2952_v38 = vld [vmem:[#allocation5 + $0x410] sm:$0xff]  }
  0xdb   : > { %2555 = vmatpush3.bf16.msra.mxu0 %v2904_v37  ;;  %v2951_v37 = vld [vmem:[#allocation5 + $0x450] sm:$0xff]  }
  0xdc   : > { %2556 = vmatprep.subr.bf16.mxu0 %v2907_v40  ;;  %v2954_v40 = vld [vmem:[#allocation5 + $0x458] sm:$0xff]  }
  0xdd   : > { %2577 = vmatpush3.bf16.msra.mxu1 %v2906_v39  ;;  %v2953_v39 = vld [vmem:[#allocation5 + $0x480] sm:$0xff]  }
  0xde   : > { %2578 = vmatprep.subr.bf16.mxu1 %v2909_v42  ;;  %v2955_v42 = vld [vmem:[#allocation5 + $0x418] sm:$0xff]  }
  0xdf   : > { %2557 = vmatpush3.bf16.msra.mxu0 %v2908_v41  ;;  %v2956_v41 = vld [vmem:[#allocation5 + $0x488] sm:$0xff]  }
  0xe0   : > { %2558 = vmatprep.subr.bf16.mxu0 %v2911_v44  ;;  %v2959_v44 = vld [vmem:[#allocation5 + $0x490] sm:$0xff]  }
  0xe1   : > { %2579 = vmatpush3.bf16.msra.mxu1 %v2910_v43  ;;  %v2957_v43 = vld [vmem:[#allocation5 + $0x460] sm:$0xff]  }
  0xe2   : > { %2580 = vmatprep.subr.bf16.mxu1 %v2913_v46  ;;  %v2960_v46 = vld [vmem:[#allocation5 + $0x468] sm:$0xff]  }
  0xe3   : > { %2559 = vmatpush3.bf16.msra.mxu0 %v2912_v45  ;;  %v2958_v45 = vld [vmem:[#allocation5 + $0x420] sm:$0xff]  }
  0xe4   : > { %2588 = vmatprep.subr.bf16.mxu0 %v2915_v52  ;;  %v2964_v52 = vld [vmem:[#allocation5 + $0x430] sm:$0xff]  }
  0xe5   : > { %2581 = vmatpush3.bf16.msra.mxu1 %v2914_v49  ;;  %v2963_v49 = vld [vmem:[#allocation5 + $0x470] sm:$0xff]  }
  0xe6   : > { %1728 = vmatmul.mubr.bf16.vlgmr.msra.gmra.mrb[8].mxu0 %v313_v51  ;;  %2610 = vmatprep.subr.bf16.mxu1 %v2917_v58  ;;  %v303_v51 = vld [vmem:[%s3417_s17 + $0x88] sm:$0xff]  ;;  %v302_v58 = vld [vmem:[%s3417_s17 + $0x80] sm:$0xff]  ;;  %s3183_s17 = smov [#allocation10]  }
  0xe7   : > { %2589 = vmatpush3.bf16.msra.mxu0 %v2916_v55  ;;  %1807 = vmatprep.mubr.bf16.mxu0 %v318_v24  ;;  %v322_v54 = vpack.c.bf16 %v303_v51, %v303_v51  ;;  %v2968_v55 = vld [vmem:[#allocation5 + $0x4a8] sm:$0xff]   ;;  %s3103_s24 = sshll.u32 %s3183_s17, 4  ;;  %s3104_s24 = int_to_ptr.vmem [resolvable:$false] %s3103_s24 }
  0xe8   : > { %1768 = vmatmul.mubr.bf16.vlgmr.msra.gmra.mrb[8].mxu1 %v315_v57  ;;  %2590 = vmatprep.subr.bf16.mxu0 %v2919_v60  ;;  %v2967_v57 = vld [vmem:[#allocation5 + $0x438] sm:$0xff]   ;;  %v321_v60 = vpack.c.bf16 %v302_v58, %v302_v58  ;;  %s3105_s26 = scalar_lea.vmem %s3104_s24, 256  ;;  %p3106_p12 = scmp.lt.s32.totalorder %s3494_s8, %s3104_s24 }
  0xe9   : > { %2611 = vmatpush3.bf16.msra.mxu1 %v2918_v59  ;;  %1847 = vmatprep.mubr.bf16.mxu1 %v320_v30  ;;  %v323_v59 = vpack.c.bf16 %v304_v56, %v304_v56  ;;  %p3107_p1 = scmp.lt.s32.totalorder %s3105_s26, %s3099_s22 }
  0xea   : > { %2612 = vmatprep.subr.bf16.mxu1 %v2921_v62  ;;  %v2970_v62 = vld [vmem:[#allocation7 + $0x8] sm:$0xff]  }
  0xeb   : > { %2591 = vmatpush3.bf16.msra.mxu0 %v2920_v61  ;;  %v2969_v61 = vld [vmem:[#allocation7] sm:$0xff]   ;;  %p3108_p2 = por %p3107_p1, %p3106_p12 }
  0xec   : > { %2592 = vmatprep.subr.bf16.mxu0 %v2923_v0  ;;  %v2972_v0 = vld [vmem:[#allocation7 + $0x18] sm:$0xff]  }
  0xed   : > { %2613 = vmatpush3.bf16.msra.mxu1 %v2922_v63  ;;  %v2971_v63 = vld [vmem:[#allocation7 + $0x10] sm:$0xff]   ;;  %p3109_p4 = pnand %p3108_p2, %p3102_p7 }
  0xee   : > { %2614 = vmatprep.subr.bf16.mxu1 %v2925_v2 }
  0xef   : > { %2593 = vmatpush3.bf16.msra.mxu0 %v2924_v1  ;;  %v2973_v1 = vld [vmem:[#allocation7 + $0x20] sm:$0xff]  }
  0xf0   : > { %2594 = vmatprep.subr.bf16.mxu0 %v2927_v4 }
  0xf1   : > { %2615 = vmatpush3.bf16.msra.mxu1 %v2926_v3  ;;  %v2282_v3 = vld [vmem:[%s3540_s4] ss:$0 sm:$0xff] }
  0xf2   : > { %2616 = vmatprep.subr.bf16.mxu1 %v2929_v6 }
  0xf3   : > { %2595 = vmatpush3.bf16.msra.mxu0 %v2928_v5 }
  0xf4   : > { %2596 = vmatprep.subr.bf16.mxu0 %v2931_v8 }
  0xf5   : > { %2617 = vmatpush3.bf16.msra.mxu1 %v2930_v7 }
  0xf6   : > { %2618 = vmatprep.subr.bf16.mxu1 %v2933_v10 }
  0xf7   : > { %2597 = vmatpush3.bf16.msra.mxu0 %v2932_v9 }
  0xf8   : > { %2598 = vmatprep.subr.bf16.mxu0 %v2935_v12 }
  0xf9   : > { %2619 = vmatpush3.bf16.msra.mxu1 %v2934_v11  ;;  %v2974_v11 = vld [vmem:[#allocation7 + $0x28] sm:$0xff]  }
  0xfa   : > { %2620 = vmatprep.subr.bf16.mxu1 %v2937_v14 }
  0xfb   : > { %2599 = vmatpush3.bf16.msra.mxu0 %v2936_v13 }
  0xfc   : > { %2600 = vmatprep.subr.bf16.mxu0 %v2939_v16  ;;  %v2975_v16 = vld [vmem:[#allocation7 + $0x30] sm:$0xff]  }
  0xfd   : > { %2621 = vmatpush3.bf16.msra.mxu1 %v2938_v15 }
  0xfe   : > { %2622 = vmatprep.subr.bf16.mxu1 %v2941_v18  ;;  %v2977_v18 = vld [vmem:[#allocation8] sm:$0xff]  }
  0xff   : > { %2601 = vmatpush3.bf16.msra.mxu0 %v2940_v17  ;;  %v2976_v17 = vld [vmem:[#allocation7 + $0x38] sm:$0xff]  }
 0x100   : > { %2602 = vmatprep.subr.bf16.mxu0 %v2943_v20  ;;  %v2979_v20 = vld [vmem:[#allocation8 + $0x10] sm:$0xff]  }
 0x101   : > { %2623 = vmatpush3.bf16.msra.mxu1 %v2942_v19  ;;  %v2978_v19 = vld [vmem:[#allocation8 + $0x8] sm:$0xff]  }
 0x102   : > { %2624 = vmatprep.subr.bf16.mxu1 %v2945_v22  ;;  %v2981_v22 = vld [vmem:[#allocation8 + $0x20] sm:$0xff]  }
 0x103   : > { %2603 = vmatpush3.bf16.msra.mxu0 %v2944_v21  ;;  %v2980_v21 = vld [vmem:[#allocation8 + $0x18] sm:$0xff]  }
 0x104   : > { %2632 = vmatprep.subr.bf16.mxu0 %v2947_v28 }
 0x105   : > { %2625 = vmatpush3.bf16.msra.mxu1 %v2946_v25  ;;  %v2982_v25 = vld [vmem:[#allocation8 + $0x28] sm:$0xff]  }
 0x106   : > { %1808 = vmatmul.mubr.bf16.vlgmr.msra.gmra.mrb[12].mxu0 %v317_v27  ;;  %2679 = vmatprep.subr.bf16.mxu1 %v3181_v36 }
 0x107   : > { %2633 = vmatpush3.bf16.msra.mxu0 %v2948_v31  ;;  %1887 = vmatprep.mubr.bf16.mxu0 %v322_v54 }
 0x108   : > { %1848 = vmatmul.mubr.bf16.vlgmr.msra.gmra.mrb[12].mxu1 %v319_v33  ;;  %2634 = vmatprep.subr.bf16.mxu0 %v2949_v34 }
 0x109   : > { %2691 = vmatprep.mubr.msk.bf16.mxu1 %vm3182_vm0, %v3181_v36  ;;  %2680 = vmatpush3.bf16.msra.mxu1 %v2953_v39 }
 0x10a   : > { %2681 = vmatprep.subr.bf16.mxu1 %v3181_v36 }
 0x10b   : > { %2635 = vmatpush3.bf16.msra.mxu0 %v2950_v35 }
 0x10c   : > { %2636 = vmatprep.subr.bf16.mxu0 %v2951_v37 }
 0x10d   : > { %2682 = vmatpush3.bf16.msra.mxu1 %v2956_v41 }
 0x10e   : > { %2683 = vmatprep.subr.bf16.mxu1 %v3181_v36 }
 0x10f   : > { %2637 = vmatpush3.bf16.msra.mxu0 %v2952_v38 }
 0x110   : > { %2638 = vmatprep.subr.bf16.mxu0 %v2954_v40 }
 0x111   : > { %2684 = vmatpush3.bf16.msra.mxu1 %v2959_v44 }
 0x112   : > { %2685 = vmatprep.subr.bf16.mxu1 %v3181_v36 }
 0x113   : > { %2639 = vmatpush3.bf16.msra.mxu0 %v2955_v42 }
 0x114   : > { %2640 = vmatprep.subr.bf16.mxu0 %v2957_v43 }
 0x115   : > { %2686 = vmatpush3.bf16.msra.mxu1 %v2962_v47 }
 0x116   : > { %2687 = vmatprep.subr.bf16.mxu1 %v3181_v36 }
 0x117   : > { %2641 = vmatpush3.bf16.msra.mxu0 %v2958_v45 }
 0x118   : > { %2642 = vmatprep.subr.bf16.mxu0 %v2960_v46 }
 0x119   : > { %2688 = vmatpush3.bf16.msra.mxu1 %v2965_v50 }
 0x11a   : > { %2689 = vmatprep.subr.bf16.mxu1 %v3181_v36 }
 0x11b   : > { %2643 = vmatpush3.bf16.msra.mxu0 %v2961_v48 }
 0x11c   : > { %2644 = vmatprep.subr.bf16.mxu0 %v2963_v49 }
 0x11d   : > { %2690 = vmatpush3.bf16.msra.mxu1 %v2968_v55 }
 0x11e   : > { %2695 = vmatprep.subr.bf16.mxu1 %v3181_v36 }
 0x11f   : > { %2645 = vmatpush3.bf16.msra.mxu0 %v2964_v52 }
 0x120   : > { %2646 = vmatprep.subr.bf16.mxu0 %v2966_v53  ;;  %2692 = vmatmul.mubr.msk.bf16.vlgmr.msra.gmra.mrb[16].mxu1 %vm1531_vm1, %v323_v59 }
 0x121   : > { %2711 = vmatprep.mubr.msk.bf16.mxu1 %vm3182_vm0, %v3181_v36  ;;  %2696 = vmatpush3.bf16.msra.mxu1 %v2969_v61 }
 0x122   : > { %2697 = vmatprep.subr.bf16.mxu1 %v3181_v36 }
 0x123   : > { %2647 = vmatpush3.bf16.msra.mxu0 %v2967_v57 }
 0x124   : > { %2715 = vmatprep.subr.bf16.mxu0 %v3181_v36 }
 0x125   : > { %2698 = vmatpush3.bf16.msra.mxu1 %v2970_v62 }
 0x126   : > { %1888 = vmatmul.mubr.bf16.vlgmr.msra.gmra.mrb[16].mxu0 %v321_v60  ;;  %2699 = vmatprep.subr.bf16.mxu1 %v3181_v36 }
 0x127   : > { %2731 = vmatprep.mubr.msk.bf16.mxu0 %vm3182_vm0, %v3181_v36  ;;  %2716 = vmatpush3.bf16.msra.mxu0 %v2977_v18 }
 0x128   : > { %2717 = vmatprep.subr.bf16.mxu0 %v3181_v36 }
 0x129   : > { %2700 = vmatpush3.bf16.msra.mxu1 %v2971_v63 }
 0x12a   : > { %2701 = vmatprep.subr.bf16.mxu1 %v3181_v36 }
 0x12b   : > { %2718 = vmatpush3.bf16.msra.mxu0 %v2978_v19 }
 0x12c   : > { %2719 = vmatprep.subr.bf16.mxu0 %v3181_v36 }
 0x12d   : > { %2702 = vmatpush3.bf16.msra.mxu1 %v2972_v0 }
 0x12e   : > { %2703 = vmatprep.subr.bf16.mxu1 %v3181_v36 }
 0x12f   : > { %2720 = vmatpush3.bf16.msra.mxu0 %v2979_v20 }
 0x130   : > { %2721 = vmatprep.subr.bf16.mxu0 %v3181_v36 }
 0x131   : > { %2704 = vmatpush3.bf16.msra.mxu1 %v2973_v1 }
 0x132   : > { %2705 = vmatprep.subr.bf16.mxu1 %v3181_v36 }
 0x133   : > { %2722 = vmatpush3.bf16.msra.mxu0 %v2980_v21 }
 0x134   : > { %2723 = vmatprep.subr.bf16.mxu0 %v3181_v36 }
 0x135   : > { %2706 = vmatpush3.bf16.msra.mxu1 %v2974_v11  ;;  %v2984_v11 = vld [vmem:[#allocation8 + $0x38] sm:$0xff]  }
 0x136   : > { %2707 = vmatprep.subr.bf16.mxu1 %v3181_v36 }
 0x137   : > { %2724 = vmatpush3.bf16.msra.mxu0 %v2981_v22 }
 0x138   : > { %2725 = vmatprep.subr.bf16.mxu0 %v3181_v36 }
 0x139   : > { %2708 = vmatpush3.bf16.msra.mxu1 %v2975_v16 }
 0x13a   : > { %2709 = vmatprep.subr.bf16.mxu1 %v3181_v36 }
 0x13b   : > { %2726 = vmatpush3.bf16.msra.mxu0 %v2982_v25 }
 0x13c   : > { %2727 = vmatprep.subr.bf16.mxu0 %v3181_v36 }
 0x13d   : > { %2710 = vmatpush3.bf16.msra.mxu1 %v2976_v17 }
 0x179   : > { %v2472_v2 = vpop.f32.mrb[0].mxu0 }
 0x17a   : > { %v2473_v4 = vpop.f32.mrb[1].mxu0 }
 0x17b   : > { %v2474_v5 = vadd.f32 %v2473_v4, %v2472_v2  ;;  %v2475_v6 = vpop.f32.mrb[2].mxu0  ;;  %v2494_v7 = vpop.f32.mrb[0].mxu1 }
 0x17c   : > { %v2476_v8 = vpop.f32.mrb[3].mxu0  ;;  %v2495_v10 = vpop.f32.mrb[1].mxu1 }
 0x17d   : > { %v1570_v9 = vadd.f32 %v2474_v5, %v2282_v3  ;;  %v2496_v12 = vadd.f32 %v2495_v10, %v2494_v7  ;;  %v2497_v13 = vpop.f32.mrb[2].mxu1  ;;  %v2983_v10 = vld [vmem:[#allocation8 + $0x30] sm:$0xff]  }
 0x17e   : > { %v2498_v14 = vpop.f32.mrb[3].mxu1  ;;  %2728 = vmatpush3.bf16.msra.mxu0 %v2983_v10 }
 0x17f   : > { %v1610_v15 = vadd.f32 %v2496_v12, %v1570_v9  ;;  %2729 = vmatprep.subr.bf16.mxu0 %v3181_v36  ;;  %v2434_v12 = vld [vmem:[%s3540_s4 + $0x1] ss:$0 sm:$0xff]  ;;  %v2443_v36 = vld [vmem:[%s3540_s4 + $0x2] ss:$0 sm:$0xff] }
 0x182   : > { %2730 = vmatpush3.bf16.msra.mxu0 %v2984_v11 }
 0x199   : > { %v2516_v23 = vpop.f32.mrb[4].mxu0 }
 0x19a   : > { %v2517_v24 = vpop.f32.mrb[5].mxu0 }
 0x19b   : > { %v2518_v26 = vadd.f32 %v2517_v24, %v2516_v23  ;;  %v2519_v27 = vpop.f32.mrb[6].mxu0  ;;  %v2538_v28 = vpop.f32.mrb[4].mxu1 }
 0x19c   : > { %v2520_v29 = vpop.f32.mrb[7].mxu0  ;;  %v2539_v31 = vpop.f32.mrb[5].mxu1 }
 0x19d   : > { %v1650_v30 = vadd.f32 %v2518_v26, %v1610_v15  ;;  %v2540_v32 = vadd.f32 %v2539_v31, %v2538_v28  ;;  %v2541_v33 = vpop.f32.mrb[6].mxu1 }
 0x19e   : > { %v2542_v34 = vpop.f32.mrb[7].mxu1 }
 0x19f   : > { %v1690_v35 = vadd.f32 %v2540_v32, %v1650_v30 }
 0x1b9   : > { %v2560_v37 = vpop.f32.mrb[8].mxu0 }
 0x1ba   : > { %v2561_v38 = vpop.f32.mrb[9].mxu0 }
 0x1bb   : > { %v2562_v39 = vadd.f32 %v2561_v38, %v2560_v37  ;;  %v2563_v40 = vpop.f32.mrb[10].mxu0  ;;  %v2582_v41 = vpop.f32.mrb[8].mxu1 }
 0x1bc   : > { %v2564_v42 = vpop.f32.mrb[11].mxu0  ;;  %v2583_v43 = vpop.f32.mrb[9].mxu1 }
 0x1bd   : > { %v1730_v44 = vadd.f32 %v2562_v39, %v1690_v35  ;;  %v2584_v45 = vadd.f32 %v2583_v43, %v2582_v41  ;;  %v2585_v46 = vpop.f32.mrb[10].mxu1 }
 0x1be   : > { %v2586_v47 = vpop.f32.mrb[11].mxu1 }
 0x1bf   : > { %v1770_v48 = vadd.f32 %v2584_v45, %v1730_v44 }
 0x1d9   : > { %v2604_v49 = vpop.f32.mrb[12].mxu0 }
 0x1da   : > { %v2605_v50 = vpop.f32.mrb[13].mxu0 }
 0x1db   : > { %v2606_v51 = vadd.f32 %v2605_v50, %v2604_v49  ;;  %v2607_v52 = vpop.f32.mrb[14].mxu0  ;;  %v2626_v53 = vpop.f32.mrb[12].mxu1 }
 0x1dc   : > { %v2608_v54 = vpop.f32.mrb[15].mxu0  ;;  %v2627_v56 = vpop.f32.mrb[13].mxu1 }
 0x1dd   : > { %v1810_v55 = vadd.f32 %v2606_v51, %v1770_v48  ;;  %v2628_v57 = vadd.f32 %v2627_v56, %v2626_v53  ;;  %v2629_v58 = vpop.f32.mrb[14].mxu1 }
 0x1de   : > { %v2630_v59 = vpop.f32.mrb[15].mxu1 }
 0x1df   : > { %v1850_v60 = vadd.f32 %v2628_v57, %v1810_v55 }
 0x1f3   : > { %v1929_v61 = vpop.f32.mrb[16].mxu1 }
 0x1f4   : > { %v2693_v62 = vpop.f32.mrb[17].mxu1 }
 0x1f5   : > { %v1932_v0 = vpop.f32.mrb[18].mxu1 }
 0x1f6   : > { %v2694_v2 = vpop.f32.mrb[19].mxu1 }
 0x1f9   : > { %v2648_v63 = vpop.f32.mrb[16].mxu0 }
 0x1fa   : > { %v2649_v1 = vpop.f32.mrb[17].mxu0 }
 0x1fb   : > { %v2650_v3 = vadd.f32 %v2649_v1, %v2648_v63  ;;  %v2651_v4 = vpop.f32.mrb[18].mxu0 }
 0x1fc   : > { %v2652_v5 = vpop.f32.mrb[19].mxu0 }
 0x1fd   : > { %v1890_v6 = vadd.f32 %v2650_v3, %v1850_v60 }
 0x1ff   : > { %v1930_v7 = vadd.f32 %v1929_v61, %v1890_v6 }
 0x201   : > { %v1935_v8 = vmax.f32 %v1930_v7, 0.0 }
 0x203   : > { %v1936_v9 = vpack.c.bf16 %v1935_v8, %v1935_v8 }
 0x205   : > { %2712 = vmatmul.mubr.bf16.vlgmr.msra.gmra.mrb[20].mxu1 %v1936_v9 }
 0x2d8   : > { %v2039_v13 = vpop.f32.mrb[20].mxu1 }
 0x2d9   : > { %v2040_v14 = vadd.f32 %v2434_v12, %v2039_v13  ;;  %v2713_v15 = vpop.f32.mrb[21].mxu1 }
 0x2da   : > { %v2042_v16 = vpop.f32.mrb[22].mxu1 }
 0x2db   : > { %v2045_v17 = vmax.f32 %v2040_v14, 0.0  ;;  %v2714_v18 = vpop.f32.mrb[23].mxu1 }
 0x2dd   : > { %v2046_v19 = vpack.c.bf16 %v2045_v17, %v2045_v17 }
 0x2df   : > { %2732 = vmatmul.mubr.bf16.vlgmr.msra.gmra.mrb[20].mxu0 %v2046_v19 }
 0x3b2   : > { %v2149_v20 = vpop.f32.mrb[20].mxu0 }
 0x3b3   : > { %v2150_v21 = vadd.f32 %v2443_v36, %v2149_v20  ;;  %v2733_v22 = vpop.f32.mrb[21].mxu0 }
 0x3b4   : > { %v2152_v23 = vpop.f32.mrb[22].mxu0 }
 0x3b5   : > { %v2155_v24 = vmax.f32 %v2150_v21, 0.0  ;;  %v2734_v25 = vpop.f32.mrb[23].mxu0 }
 0x3b7   : > { %2156 = vst [vmem:[%s284_s9] sm:$0xff] %v2155_v24 }
 0x3b8   : > { %3112 = shalt.err (!%p3109_p4)
}
 0x3b9   : > { %s3113_s6 = scalar_lea.hbm %s3492_s28, 128  ;;  %s3117_s15 = scalar_lea.hbm %s3541_s5, 256 }
 0x3ba   : > { %p3114_p0 = scmp.ne.s32.totalorder %s3492_s28, %s3113_s6  ;;  %p3118_p8 = scmp.lt.u32.totalorder %s3492_s28, %s3541_s5 }
 0x3bb   : > { %p3119_p13 = scmp.lt.u32.totalorder %s3117_s15, %s3113_s6  ;;  %p3121_p10 = scmp.lt.u32.totalorder %s3113_s6, %s3492_s28 }
 0x3bc   : > { %p3115_p9 = pnand %p3114_p0, %p3368_p5 }
 0x3bd   : > { %p3120_p6 = por %p3119_p13, %p3118_p8 }
 0x3be   : > { %p3116_p11 = pneg %p3115_p9 }
 0x3bf   : > { %p3122_p3 = por %p3121_p10, %p3120_p6 }
 0x3c1   : > { %p3123_p7 = pnand %p3122_p3, %p3116_p11 }
 0x3c3   : > { %3126 = shalt.err (!%p3123_p7)
}
 0x3c4   : > { %2752 = dma.vmem_to_hbm [thread:$0]  (%p3368_p5), %s3494_s8, 128, %s3492_s28, %s2158_s29  }
 0x3c5 PF: > { %s2183_s27 = sand.u32 1, %s3161_s18   ;;  %p3559_p12 = scmp.ne.s32.totalorder %s3546_s25, 0 }
 0x3c6   : > { %p3560_p1 = scmp.ge.s32.totalorder %s3173_s21, 2  ;;  %s2184_s9 = scalar_lea.sflag [#allocation4], %s2183_s27 }
 0x3c8   : > { %p2769_p2 = pnand %p3560_p1, %p3559_p12 }
 0x3ca   : > { %3156 = dma.done.wait (!%p2769_p2), %s2184_s9, 128  }
 0x3cb   : > { %3158 = vsyncadd (!%p2769_p2), %s2184_s9, 4294967168  ;;  %p20_p4 = scmp.ge.s32.totalorder %s3354_s14, 4   ;;  %s3561_s18 = smov %s3165_s19 }
 0x3cc   : > { %s3562_s19 = smov %s3169_s20  ;;  %s3563_s20 = smov %s3364_s30 }
 0x3cd   : > { %s3564_s21 = smov %s3354_s14  ;;  %22 = sbr.rel (!%p20_p4) target bundleno = 7 (0x7), region = 97 }
 0x3d4   :  { %2189 = vsyncpa [#allocation3], 1 }
 0x3d5   :  { %2191 = vsyncpa [#allocation3 + $0x1], 1 }
 0x3d6   :  { %2192 = vsyncpa [#allocation6], 1 }
 0x3d7   :  { %2193 = vsyncpa [#allocation9], 1 }
 0x3d8   :  { %2194 = vsyncpa [#allocation4], 1 }
 0x3d9   :  { %2196 = vsyncpa [#allocation4 + $0x1], 1 }

</bundles_post_ra>
